<compile_context>
chip_gen: v5e
topology: v5e:2x2
jax: 0.10.0
libtpu: 0.0.40
codegen_flags: <defaults>
</compile_context>

<pallas_src>
import functools

import jax
import jax.numpy as jnp
from jax.experimental import pallas as pl
from jax.experimental.pallas import tpu as pltpu


_VMEM_LIMIT_BYTES = 48 * 1024 * 1024  # safe on v5e/v6e (128 MiB) and v7x (64 MiB)


# ----------------------------------------------------------------------------
# Tiled linear:  out = x @ wT + b
# ----------------------------------------------------------------------------
def _linear_kernel(x_ref, wT_ref, b_ref, o_ref, acc_ref):
    k = pl.program_id(2)

    @pl.when(k == 0)
    def _():
        acc_ref[...] = jnp.zeros_like(acc_ref)

    acc_ref[...] += jnp.dot(
        x_ref[...], wT_ref[...], preferred_element_type=jnp.float32
    )

    @pl.when(k == pl.num_programs(2) - 1)
    def _():
        o_ref[...] = (acc_ref[...] + b_ref[...].astype(jnp.float32)).astype(o_ref.dtype)


def _pick_tile(dim, candidates):
    """Largest candidate that evenly divides `dim`, else the full dim."""
    for c in candidates:
        if dim % c == 0:
            return c
    return dim


def pallas_linear(x2d, wT, b2d):
    """x2d: (M, Cin); wT: (Cin, Cout) (pre-transposed); b2d: (1, Cout) -> (M, Cout)."""
    M, Cin = x2d.shape
    Cout = wT.shape[1]

    # Tile sizes: 128-multiples for lane dims (or fall back to the full dim,
    # which satisfies the (8,128) BlockSpec rule).  Capped so double-buffered
    # inputs + acc stay far below v7x's 64 MiB VMEM.
    tm = _pick_tile(M, (512, 256, 128, 64, 32, 16, 8))
    tn = _pick_tile(Cout, (256, 128))
    tk = _pick_tile(Cin, (512, 256, 128))
    grid = (M // tm, Cout // tn, Cin // tk)

    itemsize = x2d.dtype.itemsize
    cost = pl.CostEstimate(
        flops=2 * M * Cin * Cout,
        transcendentals=0,
        bytes_accessed=(x2d.size + wT.size + b2d.size + M * Cout) * itemsize,
    )

    return pl.pallas_call(
        _linear_kernel,
        out_shape=jax.ShapeDtypeStruct((M, Cout), x2d.dtype),
        grid=grid,
        in_specs=[
            pl.BlockSpec((tm, tk), lambda i, j, k: (i, k)),
            pl.BlockSpec((tk, tn), lambda i, j, k: (k, j)),
            pl.BlockSpec((1, tn), lambda i, j, k: (0, j)),
        ],
        out_specs=pl.BlockSpec((tm, tn), lambda i, j, k: (i, j)),
        scratch_shapes=[pltpu.VMEM((tm, tn), jnp.float32)],
        compiler_params=pltpu.CompilerParams(
            dimension_semantics=("parallel", "parallel", "arbitrary"),
            vmem_limit_bytes=_VMEM_LIMIT_BYTES,
        ),
        cost_estimate=cost,
    )(x2d, wT, b2d)


# ----------------------------------------------------------------------------
# Attention core kernels: one batch element (all heads batched) per grid step.
# q/k/v blocks are (1, H, N, Dh); matmuls use a leading head-batch dim so the
# MXU sees H*N / H*Dh sized work instead of tiny per-head tiles.
# ----------------------------------------------------------------------------
def _attn_plain_kernel(q_ref, k_ref, v_ref, o_ref, *, scale):
    q = q_ref[0] * scale          # (H, N, Dh) — scale folded into q (O(N*Dh) muls)
    k = k_ref[0]
    v = v_ref[0]

    # q @ k^T without materializing a transpose: contract on Dh of both operands.
    s = jnp.einsum("hqd,hkd->hqk", q, k, preferred_element_type=jnp.float32)

    m = jnp.max(s, axis=-1, keepdims=True)
    e = jnp.exp(s - m)
    denom = jnp.sum(e, axis=-1, keepdims=True)
    attn = e * pl.reciprocal(denom, approx=True)          # EUP, not VALU divides

    out = jnp.einsum(
        "hqk,hkd->hqd", attn.astype(v.dtype), v, preferred_element_type=jnp.float32
    )
    o_ref[0] = out.astype(o_ref.dtype)


def _attn_policy_kernel(q_ref, k_ref, v_ref, pol_ref, o_ref, *, scale, eps):
    q = q_ref[0] * scale          # (H, N, Dh)
    k = k_ref[0]
    v = v_ref[0]

    s = jnp.einsum("hqd,hkd->hqk", q, k, preferred_element_type=jnp.float32)
    n = s.shape[-1]

    m = jnp.max(s, axis=-1, keepdims=True)
    e = jnp.exp(s - m)

    # attn_policy[i, j] = 1 if i == j else pol[j]  (single compare + select)
    pol = pol_ref[0, 0, :].astype(jnp.float32)                       # (N,)
    row = jax.lax.broadcasted_iota(jnp.int32, (n, n), 0)
    col = jax.lax.broadcasted_iota(jnp.int32, (n, n), 1)
    attn_policy = jnp.where(row == col, 1.0, pol[None, :])           # (N, N)

    e = e * attn_policy[None, :, :]
    denom = jnp.sum(e, axis=-1, keepdims=True) + eps
    attn = (e + eps / n) * pl.reciprocal(denom, approx=True)

    out = jnp.einsum(
        "hqk,hkd->hqd", attn.astype(v.dtype), v, preferred_element_type=jnp.float32
    )
    o_ref[0] = out.astype(o_ref.dtype)


def _attn_cost(B, H, N, Dh, itemsize):
    return pl.CostEstimate(
        flops=2 * 2 * B * H * N * N * Dh,
        transcendentals=B * H * N * N,
        bytes_accessed=4 * B * H * N * Dh * itemsize,
    )


def pallas_attention_core(q, k, v, policy_b1n, scale):
    """q/k/v: (B, H, N, Dh); policy_b1n: (B, 1, N) or None -> (B, H, N, Dh)."""
    B, H, N, Dh = q.shape
    qkv_spec = pl.BlockSpec((1, H, N, Dh), lambda b: (b, 0, 0, 0))
    params = pltpu.CompilerParams(
        dimension_semantics=("parallel",),
        vmem_limit_bytes=_VMEM_LIMIT_BYTES,
    )
    cost = _attn_cost(B, H, N, Dh, q.dtype.itemsize)
    out_shape = jax.ShapeDtypeStruct((B, H, N, Dh), q.dtype)

    # TODO(synk): for very long sequences (N >= ~1024) tile the KV axis
    # flash-style instead of holding the full (H, N, N) score block in VMEM.
    if policy_b1n is None:
        kernel = functools.partial(_attn_plain_kernel, scale=scale)
        return pl.pallas_call(
            kernel,
            out_shape=out_shape,
            grid=(B,),
            in_specs=[qkv_spec, qkv_spec, qkv_spec],
            out_specs=qkv_spec,
            compiler_params=params,
            cost_estimate=cost,
        )(q, k, v)

    kernel = functools.partial(_attn_policy_kernel, scale=scale, eps=1e-6)
    pol_spec = pl.BlockSpec((1, 1, N), lambda b: (b, 0, 0))
    return pl.pallas_call(
        kernel,
        out_shape=out_shape,
        grid=(B,),
        in_specs=[qkv_spec, qkv_spec, qkv_spec, pol_spec],
        out_specs=qkv_spec,
        compiler_params=params,
        cost_estimate=cost,
    )(q, k, v, policy_b1n)


# ----------------------------------------------------------------------------
# Module wrapper (parameters + forward glue)
# ----------------------------------------------------------------------------
class AttentionPallas:
    def __init__(self, dim, num_heads=12, qkv_bias=True, qk_scale=None, *, key):
        self.num_heads = num_heads
        head_dim = dim // num_heads
        self.scale = qk_scale or head_dim ** (-0.5)
        self.n_segment = 8

        k1, k2, k3, k4 = jax.random.split(key, 4)
        # Deterministic synthetic parameters (nn.Linear shapes: (out, in) + (out,)).
        w_qkv = 0.02 * jax.random.normal(k1, (dim * 3, dim), jnp.float32)
        b_qkv = (
            0.02 * jax.random.normal(k2, (dim * 3,), jnp.float32)
            if qkv_bias else jnp.zeros((dim * 3,), jnp.float32)
        )
        w_proj = 0.02 * jax.random.normal(k3, (dim, dim), jnp.float32)
        b_proj = 0.02 * jax.random.normal(k4, (dim,), jnp.float32)

        # Pre-transpose / pre-reshape once so no HBM transpose happens per call.
        self.w_qkv_T = jnp.asarray(w_qkv.T)            # (C, 3C)
        self.b_qkv = b_qkv.reshape(1, dim * 3)         # (1, 3C)
        self.w_proj_T = jnp.asarray(w_proj.T)          # (C, C)
        self.b_proj = b_proj.reshape(1, dim)           # (1, C)

    def __call__(self, x, policy, sampler):
        # x: (N, B, C); policy: (B, N, 1) or None; sampler unused (as in PyTorch).
        N, B, C = x.shape
        H = self.num_heads
        Dh = C // H

        # qkv projection (tiled Pallas matmul)
        qkv = pallas_linear(x.reshape(N * B, C), self.w_qkv_T, self.b_qkv)  # (N*B, 3C)
        qkv = qkv.reshape(N, B, 3, H, Dh)
        qkv = jnp.transpose(qkv, (2, 1, 3, 0, 4))          # (3, B, H, N, Dh), one copy
        q, k, v = qkv[0], qkv[1], qkv[2]

        if policy is not None:
            policy_b1n = jnp.transpose(policy, (0, 2, 1)).astype(x.dtype)   # (B, 1, N)
        else:
            policy_b1n = None    # specialized kernel: no dummy operand / DMA

        out = pallas_attention_core(q, k, v, policy_b1n, self.scale)        # (B, H, N, Dh)

        # (B, H, N, Dh) -> (N, B, C), one copy; then output projection.
        out = jnp.transpose(out, (2, 0, 1, 3)).reshape(N * B, C)
        out = pallas_linear(out, self.w_proj_T, self.b_proj)
        return out.reshape(N, B, C)


# ----------------------------------------------------------------------------
if __name__ == "__main__":
    key = jax.random.PRNGKey(0)
    k_param, k_x, k_pol = jax.random.split(key, 3)

    # Small shapes consistent with the forward: x is (N, B, C) = (seq, batch, dim)
    N, B, C, H = 8, 2, 32, 4

    attn = AttentionPallas(dim=C, num_heads=H, qkv_bias=True, key=k_param)

    x = jax.random.normal(k_x, (N, B, C), jnp.float32)
    # token-keep policy in {0, 1}, shape (B, N, 1) as in the PyTorch module
    policy = (jax.random.uniform(k_pol, (B, N, 1)) > 0.3).astype(jnp.float32)

    y_policy = attn(x, policy, sampler=None)      # policy softmax path
    y_plain = attn(x, None, sampler=None)         # plain softmax path

    jax.block_until_ready(y_policy)
    jax.block_until_ready(y_plain)

    assert y_policy.shape == (N, B, C) and y_plain.shape == (N, B, C)
    assert bool(jnp.all(jnp.isfinite(y_policy))) and bool(jnp.all(jnp.isfinite(y_plain)))
    print("KERNEL_OK")
</pallas_src>

<mosaic_0001>
module attributes {stable_mosaic.version = 11 : i64} {
  func.func @_linear_kernel(%arg0: i32, %arg1: i32, %arg2: i32, %arg3: memref<16x32xf32, #tpu.memory_space<vmem>>, %arg4: memref<32x96xf32, #tpu.memory_space<vmem>>, %arg5: memref<1x96xf32, #tpu.memory_space<vmem>>, %arg6: memref<16x96xf32, #tpu.memory_space<vmem>>, %arg7: memref<16x96xf32, #tpu.memory_space<vmem>>) attributes {dimension_semantics = [#tpu.dimension_semantics<parallel>, #tpu.dimension_semantics<parallel>, #tpu.dimension_semantics<arbitrary>], iteration_bounds = array<i64: 1, 1, 1>, scalar_prefetch = 0 : i64, scratch_operands = 1 : i64, tpu.core_type = #tpu.core_type<tc>, window_params = [{transform_indices = @transform_0, window_bounds = array<i64: 16, 32>}, {transform_indices = @transform_1, window_bounds = array<i64: 32, 96>}, {transform_indices = @transform_2, window_bounds = array<i64: 1, 96>}, {transform_indices = @transform_3, window_bounds = array<i64: 16, 96>}]} {
    %c0_i32 = arith.constant 0 : i32
    %0 = arith.cmpi eq, %arg2, %c0_i32 : i32
    %1 = arith.extui %0 : i1 to i32
    %c0_i32_0 = arith.constant 0 : i32
    %2 = arith.cmpi ne, %1, %c0_i32_0 : i32
    scf.if %2 {
      %cst_10 = arith.constant 0.000000e+00 : f32
      %12 = vector.broadcast %cst_10 : f32 to vector<16x96xf32>
      %c0_11 = arith.constant 0 : index
      %c0_12 = arith.constant 0 : index
      %13 = vector.load %arg7[%c0_11, %c0_12] : memref<16x96xf32, #tpu.memory_space<vmem>>, vector<16x96xf32>
      tpu.vector_store %arg7[%c0_11, %c0_12], %12 {strides = array<i32>} : memref<16x96xf32, #tpu.memory_space<vmem>>, vector<16x96xf32>,
    } else {
    }
    %c0 = arith.constant 0 : index
    %c0_1 = arith.constant 0 : index
    %3 = vector.load %arg7[%c0, %c0_1] : memref<16x96xf32, #tpu.memory_space<vmem>>, vector<16x96xf32>
    %c0_2 = arith.constant 0 : index
    %c0_3 = arith.constant 0 : index
    %4 = vector.load %arg3[%c0_2, %c0_3] : memref<16x32xf32, #tpu.memory_space<vmem>>, vector<16x32xf32>
    %c0_4 = arith.constant 0 : index
    %c0_5 = arith.constant 0 : index
    %5 = vector.load %arg4[%c0_4, %c0_5] : memref<32x96xf32, #tpu.memory_space<vmem>>, vector<32x96xf32>
    %cst = arith.constant dense<0.000000e+00> : vector<16x96xf32>
    %6 = tpu.matmul %4, %5, %cst {dimension_numbers = #tpu.dot_dimension_numbers<[1], [0], [0], [1], [0, 0, 1, 1], [], []>} : vector<16x32xf32>, vector<32x96xf32>, vector<16x96xf32> -> vector<16x96xf32>
    %7 = arith.addf %3, %6 : vector<16x96xf32>
    %c0_6 = arith.constant 0 : index
    %c0_7 = arith.constant 0 : index
    %8 = vector.load %arg7[%c0_6, %c0_7] : memref<16x96xf32, #tpu.memory_space<vmem>>, vector<16x96xf32>
    tpu.vector_store %arg7[%c0_6, %c0_7], %7 {strides = array<i32>} : memref<16x96xf32, #tpu.memory_space<vmem>>, vector<16x96xf32>,
    %c0_i32_8 = arith.constant 0 : i32
    %9 = arith.cmpi eq, %arg2, %c0_i32_8 : i32
    %10 = arith.extui %9 : i1 to i32
    %c0_i32_9 = arith.constant 0 : i32
    %11 = arith.cmpi ne, %10, %c0_i32_9 : i32
    scf.if %11 {
      %c0_10 = arith.constant 0 : index
      %c0_11 = arith.constant 0 : index
      %12 = vector.load %arg7[%c0_10, %c0_11] : memref<16x96xf32, #tpu.memory_space<vmem>>, vector<16x96xf32>
      %c0_12 = arith.constant 0 : index
      %c0_13 = arith.constant 0 : index
      %13 = vector.load %arg5[%c0_12, %c0_13] : memref<1x96xf32, #tpu.memory_space<vmem>>, vector<1x96xf32>
      %14 = vector.broadcast %13 : vector<1x96xf32> to vector<16x96xf32>
      %15 = arith.addf %12, %14 : vector<16x96xf32>
      %c0_14 = arith.constant 0 : index
      %c0_15 = arith.constant 0 : index
      %16 = vector.load %arg6[%c0_14, %c0_15] : memref<16x96xf32, #tpu.memory_space<vmem>>, vector<16x96xf32>
      tpu.vector_store %arg6[%c0_14, %c0_15], %15 {strides = array<i32>} : memref<16x96xf32, #tpu.memory_space<vmem>>, vector<16x96xf32>,
    } else {
    }
    return
  }
  func.func @transform_0(%arg0: i32, %arg1: i32, %arg2: i32) -> (i32, i32) {
    %c0_i32 = arith.constant 0 : i32
    return %arg0, %arg2 : i32, i32
  }
  func.func @transform_1(%arg0: i32, %arg1: i32, %arg2: i32) -> (i32, i32) {
    %c0_i32 = arith.constant 0 : i32
    return %arg2, %arg1 : i32, i32
  }
  func.func @transform_2(%arg0: i32, %arg1: i32, %arg2: i32) -> (i32, i32) {
    %c0_i32 = arith.constant 0 : i32
    %c0_i32_0 = arith.constant 0 : i32
    return %c0_i32, %arg1 : i32, i32
  }
  func.func @transform_3(%arg0: i32, %arg1: i32, %arg2: i32) -> (i32, i32) {
    %c0_i32 = arith.constant 0 : i32
    return %arg0, %arg1 : i32, i32
  }
}

</mosaic_0001>

<bundles_post_ra>
// kernel: tpu_custom_call.1
= control target key start
LH: loop header
LB: loop body
LE: loop exit
PB: predicated region body
PF: predicated region fallthrough
CT: control target
= control target key end

     0   :  { %8 = vsyncpa [#allocation4], 0  ;;  %s274_s0 = inlined_call_operand.hbm [shape: f32[16,32], index: 0, kind: input, shape index: {}]   ;;  %s275_s1 = inlined_call_operand.hbm [shape: f32[32,96], index: 1, kind: input, shape index: {}]   ;;  %s276_s2 = inlined_call_operand.vmem [shape: f32[1,96], index: 2, kind: input, shape index: {}]   ;;  %s277_s3 = inlined_call_operand.hbm [shape: f32[16,96], index: 3, kind: output, shape index: {}]  }
   0x1   :  { %9 = vsyncpa [#allocation7], 0 }
   0x2   :  { %10 = vsyncpa [#allocation5], 0  ;;  %s15_s14 = sshll.u32 %s274_s0, 4  ;;  %s221_s15 = smov [#allocation3]   ;;  %s16_s14 = int_to_ptr.hbm [resolvable:$true] %s15_s14 }
   0x3   :  { %s17_s16 = sshll.u32 %s221_s15, 4  ;;  %s28_s19 = sshll.u32 %s275_s1, 4  ;;  %s18_s16 = int_to_ptr.vmem [resolvable:$true] %s17_s16  ;;  %s29_s19 = int_to_ptr.hbm [resolvable:$true] %s28_s19 }
   0x4   :  { %s222_s20 = smov 128   ;;  %s223_s21 = smov 8  }
   0x5   :  { %23 = dma.hbm_to_vmem [thread:$0]  %s16_s14, 256, %s18_s16, [#allocation4], %s222_s20, %s222_s20, %s223_s21  }
   0x6   :  { %s224_s22 = smov [#allocation6]  }
   0x7   :  { %s30_s23 = sshll.u32 %s224_s22, 4  ;;  %s31_s23 = int_to_ptr.vmem [resolvable:$true] %s30_s23 }
   0x8   :  { %36 = dma.hbm_to_vmem [thread:$0]  %s29_s19, 512, %s31_s23, [#allocation7], %s222_s20, %s222_s20, %s223_s21  }
   0x9   :  { %215 = dma.done.wait [#allocation4], 256  }
   0xa   :  { %216 = vsyncadd [#allocation4], 4294967040 }
   0xb   :  { %217 = dma.done.wait [#allocation7], 512  }
   0xc   :  { %218 = vsyncadd [#allocation7], 4294966784  ;;  %vm51_vm0 = vcmask 785408   ;;  %v225_v0 = vmov 0.0   ;;  %v61_v1 = vld [vmem:[#allocation6 + $0x18] sm:$0xff]  ;;  %v60_v2 = vld [vmem:[#allocation6 + $0x10] sm:$0xff] }
   0xd   :  { %52 = vst.msk [vmem:[#allocation2] sm:$0xff] %vm51_vm0, %v225_v0  ;;  %81 = vmatpush.msra.mxu0 %v61_v1  ;;  %132 = vmatpush.msra.mxu1 %v61_v1  ;;  %v59_v3 = vld [vmem:[#allocation6 + $0x8] sm:$0xff]  ;;  %v58_v4 = vld [vmem:[#allocation6] sm:$0xff]  ;;  %v56_v5 = vld [vmem:[#allocation3] sm:$0xff]  ;;  %vm62_vm1 = vcmask 261120   ;;  %s226_s24 = smov [#allocation8]  }
   0xe   :  { %53 = vst.msk [vmem:[#allocation2 + $0x8] sm:$0xff] %vm51_vm0, %v225_v0  ;;  %v57_v6 = vld [vmem:[#allocation3 + $0x8] sm:$0xff]  ;;  %v142_v13 = vld [vmem:[%s276_s2] ss:$0 sm:$0xff]  ;;  %s114_s25 = sshll.u32 %s226_s24, 4  ;;  %s116_s28 = sshll.u32 %s277_s3, 4  ;;  %s115_s25 = int_to_ptr.vmem [resolvable:$true] %s114_s25  ;;  %s117_s28 = int_to_ptr.hbm [resolvable:$true] %s116_s28 }
   0xf   :  { %82 = vmatpush.msra.mxu0 %v60_v2  ;;  %133 = vmatpush.msra.mxu1 %v60_v2 }
  0x11   :  { %83 = vmatpush.msra.mxu0 %v59_v3  ;;  %134 = vmatpush.msra.mxu1 %v59_v3 }
  0x13   :  { %84 = vmatpush.msra.mxu0 %v58_v4  ;;  %135 = vmatpush.msra.mxu1 %v58_v4 }
  0x14   :  { %130 = vmatmul.msk.f32.vlgmr.msra.gmra.mxu0 %vm62_vm1, %v56_v5  ;;  %131 = vmatmul.msk.f32.vlgmr.msra.gmra.mxu1 %vm62_vm1, %v57_v6  ;;  %v54_v7 = vld [vmem:[#allocation2] sm:$0xff] }
  0x15   :  { %v55_v8 = vld [vmem:[#allocation2 + $0x8] sm:$0xff] }
  0x91   :  { %v86_v9 = vpop.f32.mrf.mxu0  ;;  %v89_v10 = vpop.f32.mrf.mxu1 }
  0x92   :  { %v92_v11 = vadd.f32 %v86_v9, %v54_v7  ;;  %v93_v12 = vadd.f32 %v89_v10, %v55_v8 }
  0x94   :  { %95 = vst.msk [vmem:[#allocation2] sm:$0xff] %vm51_vm0, %v92_v11 }
  0x95   :  { %96 = vst.msk [vmem:[#allocation2 + $0x8] sm:$0xff] %vm51_vm0, %v93_v12 }
  0x9b   :  { %v100_v14 = vld [vmem:[#allocation2] sm:$0xff] }
  0x9c   :  { %v101_v15 = vld [vmem:[#allocation2 + $0x8] sm:$0xff]  ;;  %v106_v16 = vadd.f32 %v142_v13, %v100_v14 }
  0x9d   :  { %v107_v17 = vadd.f32 %v142_v13, %v101_v15 }
  0x9e   :  { %108 = vst.msk [vmem:[#allocation8] sm:$0xff] %vm51_vm0, %v106_v16 }
  0x9f   :  { %109 = vst.msk [vmem:[#allocation8 + $0x8] sm:$0xff] %vm51_vm0, %v107_v17 }
  0xa0   :  { %122 = dma.vmem_to_hbm [thread:$0]  %s115_s25, 256, %s117_s28, [#allocation5], %s222_s20, %s222_s20, %s223_s21  }
  0xa1   :  { %219 = dma.done.wait [#allocation5], 256  }
  0xa2   :  { %220 = vsyncadd [#allocation5], 4294967040 }
  0xa3   :  { %127 = vsyncpa [#allocation4], 1 }
  0xa4   :  { %128 = vsyncpa [#allocation7], 1 }
  0xa5   :  { %129 = vsyncpa [#allocation5], 1 }

</bundles_post_ra>
